<compile_context>
chip_gen: v7x
topology: tpu7x:2x2x1
jax: 0.10.0
libtpu: 0.0.40
codegen_flags: <defaults>
</compile_context>

<pallas_src>
import jax
import jax.numpy as jnp
import numpy as np
from jax.experimental import pallas as pl
from jax.experimental.pallas import tpu as pltpu

EPS = 1e-5
NEG_SLOPE = 0.01          # nn.LeakyReLU() default
LANES = 128
MAX_TM = 512              # row tile cap (sublane axis), multiple of 8
VMEM_LIMIT = 32 * 1024 * 1024


def _round_up(x, m):
    return ((x + m - 1) // m) * m


def _pick_tm(rows, k_dim, n_dim):
    """VMEM-budgeted row tile: double-buffered (x, y) tiles + resident weight."""
    budget = VMEM_LIMIT // 2
    weight_bytes = k_dim * n_dim * 4
    per_row = (k_dim + n_dim) * 2 * 4          # 2x buffered input + output rows (f32)
    tm = (budget - weight_bytes) // max(per_row, 1)
    tm = max(8, min(MAX_TM, tm))
    tm = (tm // 8) * 8
    return min(tm, _round_up(max(rows, 8), 8))


def _pad_rows(x2d, rp):
    return jnp.pad(x2d, ((0, rp - x2d.shape[0]), (0, 0)))


# --------------------------------------------------------------------------- kernels
def _mm_stats_kernel(x_ref, w_ref, y_ref, sum_ref, ssq_ref):
    """Y = X @ W ; accumulate per-channel sum / sum-of-squares of Y across the grid."""
    i = pl.program_id(0)

    @pl.when(i == 0)
    def _():
        sum_ref[...] = jnp.zeros_like(sum_ref)
        ssq_ref[...] = jnp.zeros_like(ssq_ref)

    y = jnp.dot(x_ref[...], w_ref[...], preferred_element_type=jnp.float32)
    y_ref[...] = y
    sum_ref[...] += jnp.sum(y, axis=0, keepdims=True)
    ssq_ref[...] += jnp.sum(y * y, axis=0, keepdims=True)


def make_act_mm_stats_kernel(rows_valid, tm):
    """Y = leaky(X * a + b) @ W ; stats of Y.  (a, b) are (1, K) per-column rows."""
    need_mask = (rows_valid % tm) != 0

    def kernel(x_ref, w_ref, a_ref, b_ref, y_ref, sum_ref, ssq_ref):
        i = pl.program_id(0)

        @pl.when(i == 0)
        def _():
            sum_ref[...] = jnp.zeros_like(sum_ref)
            ssq_ref[...] = jnp.zeros_like(ssq_ref)

        x = x_ref[...] * a_ref[...] + b_ref[...]
        x = jnp.where(x > 0, x, NEG_SLOPE * x)
        if need_mask:  # zero out padded rows so they don't pollute BN statistics
            row = i * tm + jax.lax.broadcasted_iota(jnp.int32, (tm, 1), 0)
            x = jnp.where(row < rows_valid, x, 0.0)
        y = jnp.dot(x, w_ref[...], preferred_element_type=jnp.float32)
        y_ref[...] = y
        sum_ref[...] += jnp.sum(y, axis=0, keepdims=True)
        ssq_ref[...] += jnp.sum(y * y, axis=0, keepdims=True)

    return kernel


def _epilogue_kernel(o2_ref, res_ref, a2_ref, b2_ref, ad_ref, bd_ref, out_ref):
    # out = leaky( BN2(o2_pre) + BN_expand(h)_cropped ) — single fused lane-dense store.
    y = (o2_ref[...] * a2_ref[...] + b2_ref[...]
         + res_ref[...] * ad_ref[...] + bd_ref[...])
    out_ref[...] = jnp.where(y > 0, y, NEG_SLOPE * y)


# --------------------------------------------------------------------------- wrappers
def _mm_stats_call(x2d, w, *, act_ab=None):
    rows, K = x2d.shape
    Fp = w.shape[1]
    tm = _pick_tm(rows, K, Fp)
    rp = _round_up(rows, tm)
    xp = _pad_rows(x2d, rp)
    grid = (rp // tm,)

    cparams = pltpu.CompilerParams(
        dimension_semantics=("arbitrary",),      # grid axis carries the stats accumulator
        vmem_limit_bytes=VMEM_LIMIT)
    out_shape = (jax.ShapeDtypeStruct((rp, Fp), jnp.float32),
                 jax.ShapeDtypeStruct((1, Fp), jnp.float32),
                 jax.ShapeDtypeStruct((1, Fp), jnp.float32))
    out_specs = (pl.BlockSpec((tm, Fp), lambda i: (i, 0)),
                 pl.BlockSpec((1, Fp), lambda i: (0, 0)),
                 pl.BlockSpec((1, Fp), lambda i: (0, 0)))

    if act_ab is None:
        y, s, ss = pl.pallas_call(
            _mm_stats_kernel,
            grid=grid,
            in_specs=[pl.BlockSpec((tm, K), lambda i: (i, 0)),
                      pl.BlockSpec((K, Fp), lambda i: (0, 0))],
            out_specs=out_specs,
            out_shape=out_shape,
            compiler_params=cparams,
        )(xp, w)
    else:
        a_row, b_row = act_ab
        y, s, ss = pl.pallas_call(
            make_act_mm_stats_kernel(rows, tm),
            grid=grid,
            in_specs=[pl.BlockSpec((tm, K), lambda i: (i, 0)),
                      pl.BlockSpec((K, Fp), lambda i: (0, 0)),
                      pl.BlockSpec((1, K), lambda i: (0, 0)),
                      pl.BlockSpec((1, K), lambda i: (0, 0))],
            out_specs=out_specs,
            out_shape=out_shape,
            compiler_params=cparams,
        )(xp, w, a_row.reshape(1, K), b_row.reshape(1, K))

    return y[:rows], s[0], ss[0]


def _epilogue_call(o2, res, a2, b2, ad, bd):
    rows, Fp = o2.shape
    tm = _pick_tm(rows, 2 * Fp, Fp)
    rp = _round_up(rows, tm)
    row = lambda v: v.reshape(1, Fp)
    out = pl.pallas_call(
        _epilogue_kernel,
        grid=(rp // tm,),
        in_specs=[pl.BlockSpec((tm, Fp), lambda i: (i, 0)),
                  pl.BlockSpec((tm, Fp), lambda i: (i, 0)),
                  pl.BlockSpec((1, Fp), lambda i: (0, 0)),
                  pl.BlockSpec((1, Fp), lambda i: (0, 0)),
                  pl.BlockSpec((1, Fp), lambda i: (0, 0)),
                  pl.BlockSpec((1, Fp), lambda i: (0, 0))],
        out_specs=pl.BlockSpec((tm, Fp), lambda i: (i, 0)),
        out_shape=jax.ShapeDtypeStruct((rp, Fp), jnp.float32),
        compiler_params=pltpu.CompilerParams(
            dimension_semantics=("parallel",),   # independent row tiles -> megacore-friendly
            vmem_limit_bytes=VMEM_LIMIT),
    )(_pad_rows(o2, rp), _pad_rows(res, rp), row(a2), row(b2), row(ad), row(bd))
    return out[:rows]


def _bn_affine(s, ss, count, gamma, beta):
    """Finalize BN from (sum, sumsq): y = x*a + b.  Tiny (F,)-sized glue in XLA."""
    mean = s / count
    var = jnp.maximum(ss / count - mean * mean, 0.0)
    a = gamma * jax.lax.rsqrt(var + EPS)
    b = beta - mean * a
    return a, b


def _im2col_time(h, k):
    """(N, T, C) -> (N, T-k+1, k*C): fold the k conv taps into the contraction dim."""
    n, t, c = h.shape
    l = t - k + 1
    return jnp.concatenate([h[:, dk:dk + l, :] for dk in range(k)], axis=-1)


def encoder_block_forward(x, params, pool, kernel_size):
    """x: (N, Cin, L) float32, PyTorch NCL. Returns (N, F, L//pool - 2*(k-1))."""
    N, Cin, L = x.shape
    F = params['wd'].shape[0]
    k = kernel_size
    Ld = L // pool
    L1 = Ld - (k - 1)
    L2 = L1 - (k - 1)
    Fp = _round_up(F, LANES)
    Kd = Cin * pool
    Kdp = _round_up(Kd, LANES)
    f32 = jnp.float32

    def pad_gb(v):
        return jnp.pad(v.astype(f32), (0, Fp - F))

    # ---- layout glue: im2col of the stride=pool down-conv, channels-last, lane-padded
    xcol = x[:, :, :Ld * pool].reshape(N, Cin, Ld, pool)
    xcol = jnp.transpose(xcol, (0, 2, 1, 3)).reshape(N, Ld, Kd).astype(f32)
    xcol = jnp.pad(xcol, ((0, 0), (0, 0), (0, Kdp - Kd))).reshape(N * Ld, Kdp)
    wd = jnp.transpose(params['wd'], (1, 2, 0)).reshape(Kd, F).astype(f32)
    wd = jnp.pad(wd, ((0, Kdp - Kd), (0, Fp - F)))

    # ---- stage 1: expand conv (bias bd dropped: cancels in training-mode BN) + stats
    h2d, s_h, ss_h = _mm_stats_call(xcol, wd)
    a_d, b_d = _bn_affine(s_h, ss_h, N * Ld, pad_gb(params['gd']), pad_gb(params['betad']))

    # ---- stage 2: conv1 with the expand-BN scale folded into the weights (b1, b_d shift
    #      cancel in BN1); taps folded into one (k*Fp) contraction.
    h3 = h2d.reshape(N, Ld, Fp)
    hcol1 = _im2col_time(h3, k).reshape(N * L1, k * Fp)
    w1t = jnp.transpose(params['w1'], (2, 1, 0)).astype(f32)          # (k, F_in, F_out)
    w1f = w1t * a_d[:F][None, :, None]
    w1f = jnp.pad(w1f, ((0, 0), (0, Fp - F), (0, Fp - F))).reshape(k * Fp, Fp)
    o1_2d, s_1, ss_1 = _mm_stats_call(hcol1, w1f)
    a_1, b_1 = _bn_affine(s_1, ss_1, N * L1, pad_gb(params['g1']), pad_gb(params['beta1']))

    # ---- stage 3: BN1 + LeakyReLU fused into conv2's prologue (b2 cancels in BN2)
    o1_3 = o1_2d.reshape(N, L1, Fp)
    hcol2 = _im2col_time(o1_3, k).reshape(N * L2, k * Fp)
    w2t = jnp.transpose(params['w2'], (2, 1, 0)).astype(f32)
    w2p = jnp.pad(w2t, ((0, 0), (0, Fp - F), (0, Fp - F))).reshape(k * Fp, Fp)
    o2_2d, s_2, ss_2 = _mm_stats_call(hcol2, w2p,
                                      act_ab=(jnp.tile(a_1, k), jnp.tile(b_1, k)))
    a_2, b_2 = _bn_affine(s_2, ss_2, N * L2, pad_gb(params['g2']), pad_gb(params['beta2']))

    # ---- stage 4: BN2 + center-cropped residual (expand-BN applied) + LeakyReLU
    start = (Ld - L2) // 2
    res2d = h3[:, start:start + L2, :].reshape(N * L2, Fp)
    out2d = _epilogue_call(o2_2d, res2d, a_2, b_2, a_d, b_d)

    out = out2d.reshape(N, L2, Fp)[:, :, :F]
    return jnp.transpose(out, (0, 2, 1))                              # back to NCL


# --------------------------------------------------------------------------- reference
def reference_forward(x, params, pool, k):
    """Pure-JAX reference in PyTorch NCL layout (with biases, two-pass BN)."""
    N, Cin, L = x.shape
    Ld = L // pool
    xr = x[:, :, :Ld * pool].reshape(N, Cin, Ld, pool)
    h = jnp.einsum('nctp,fcp->nft', xr, params['wd']) + params['bd'][None, :, None]

    def bn(y, g, b):
        mu = jnp.mean(y, axis=(0, 2), keepdims=True)
        var = jnp.mean((y - mu) ** 2, axis=(0, 2), keepdims=True)
        return (y - mu) / jnp.sqrt(var + EPS) * g[None, :, None] + b[None, :, None]

    def leaky(y):
        return jnp.where(y > 0, y, NEG_SLOPE * y)

    h = bn(h, params['gd'], params['betad'])
    L1 = Ld - k + 1
    o1 = sum(jnp.einsum('nct,fc->nft', h[:, :, dk:dk + L1], params['w1'][:, :, dk])
             for dk in range(k)) + params['b1'][None, :, None]
    o1 = leaky(bn(o1, params['g1'], params['beta1']))
    L2 = L1 - k + 1
    o2 = sum(jnp.einsum('nct,fc->nft', o1[:, :, dk:dk + L2], params['w2'][:, :, dk])
             for dk in range(k)) + params['b2'][None, :, None]
    o2 = bn(o2, params['g2'], params['beta2'])
    start = (Ld - L2) // 2
    return leaky(o2 + h[:, :, start:start + L2])


def init_params(key, in_channels, features, kernel_size, pool):
    ks = jax.random.split(key, 10)

    def w(k_, shape, scale):
        return (scale * jax.random.normal(k_, shape)).astype(jnp.float32)

    return {
        'wd': w(ks[0], (features, in_channels, pool), 0.2),
        'bd': w(ks[1], (features,), 0.1),
        'gd': 1.0 + w(ks[2], (features,), 0.1),
        'betad': w(ks[3], (features,), 0.1),
        'w1': w(ks[4], (features, features, kernel_size), 0.2),
        'b1': w(ks[5], (features,), 0.1),
        'g1': 1.0 + w(ks[6], (features,), 0.1),
        'beta1': jnp.zeros((features,), jnp.float32),
        'w2': w(ks[7], (features, features, kernel_size), 0.2),
        'b2': w(ks[8], (features,), 0.1),
        'g2': 1.0 + w(ks[9], (features,), 0.1),
        'beta2': jnp.zeros((features,), jnp.float32),
    }


if __name__ == "__main__":
    key = jax.random.PRNGKey(0)
    kx, kp = jax.random.split(key)

    N, Cin, L = 2, 4, 16          # input (N, Cin, L) — PyTorch NCL
    F, ksz, pool = 8, 3, 2        # EncoderBlock(in_channels=4, features=8, kernel_size=3, pool=2)

    x = jax.random.normal(kx, (N, Cin, L), dtype=jnp.float32)
    params = init_params(kp, Cin, F, ksz, pool)

    fwd = jax.jit(encoder_block_forward, static_argnums=(2, 3))
    out = jax.block_until_ready(fwd(x, params, pool, ksz))

    ref = reference_forward(x, params, pool, ksz)
    np.testing.assert_allclose(np.asarray(out), np.asarray(ref), rtol=1e-4, atol=1e-4)
    assert out.shape == (N, F, L // pool - 2 * (ksz - 1))

    print("KERNEL_OK")
</pallas_src>

<mosaic_0001>
module attributes {stable_mosaic.version = 11 : i64} {
  func.func @_mm_stats_kernel(%arg0: i32, %arg1: memref<16x128xf32, #tpu.memory_space<vmem>>, %arg2: memref<128x128xf32, #tpu.memory_space<vmem>>, %arg3: memref<16x128xf32, #tpu.memory_space<vmem>>, %arg4: memref<1x128xf32, #tpu.memory_space<vmem>>, %arg5: memref<1x128xf32, #tpu.memory_space<vmem>>) attributes {dimension_semantics = [#tpu.dimension_semantics<arbitrary>], iteration_bounds = array<i64: 1>, scalar_prefetch = 0 : i64, scratch_operands = 0 : i64, tpu.core_type = #tpu.core_type<tc>, window_params = [{transform_indices = @transform_0, window_bounds = array<i64: 16, 128>}, {pipeline_mode = #tpu.pipeline_mode<synchronous>, transform_indices = @transform_1, window_bounds = array<i64: 128, 128>}, {transform_indices = @transform_2, window_bounds = array<i64: 16, 128>}, {pipeline_mode = #tpu.pipeline_mode<synchronous>, transform_indices = @transform_3, window_bounds = array<i64: 1, 128>}, {pipeline_mode = #tpu.pipeline_mode<synchronous>, transform_indices = @transform_4, window_bounds = array<i64: 1, 128>}]} {
    %c0_i32 = arith.constant 0 : i32
    %0 = arith.cmpi eq, %arg0, %c0_i32 : i32
    %1 = arith.extui %0 : i1 to i32
    %c0_i32_0 = arith.constant 0 : i32
    %2 = arith.cmpi ne, %1, %c0_i32_0 : i32
    scf.if %2 {
      %cst_16 = arith.constant 0.000000e+00 : f32
      %18 = vector.broadcast %cst_16 : f32 to vector<1x128xf32>
      %c0_17 = arith.constant 0 : index
      %c0_18 = arith.constant 0 : index
      %19 = vector.load %arg4[%c0_17, %c0_18] : memref<1x128xf32, #tpu.memory_space<vmem>>, vector<1x128xf32>
      tpu.vector_store %arg4[%c0_17, %c0_18], %18 {strides = array<i32>} : memref<1x128xf32, #tpu.memory_space<vmem>>, vector<1x128xf32>,
      %cst_19 = arith.constant 0.000000e+00 : f32
      %20 = vector.broadcast %cst_19 : f32 to vector<1x128xf32>
      %c0_20 = arith.constant 0 : index
      %c0_21 = arith.constant 0 : index
      %21 = vector.load %arg5[%c0_20, %c0_21] : memref<1x128xf32, #tpu.memory_space<vmem>>, vector<1x128xf32>
      tpu.vector_store %arg5[%c0_20, %c0_21], %20 {strides = array<i32>} : memref<1x128xf32, #tpu.memory_space<vmem>>, vector<1x128xf32>,
    } else {
    }
    %c0 = arith.constant 0 : index
    %c0_1 = arith.constant 0 : index
    %3 = vector.load %arg1[%c0, %c0_1] : memref<16x128xf32, #tpu.memory_space<vmem>>, vector<16x128xf32>
    %c0_2 = arith.constant 0 : index
    %c0_3 = arith.constant 0 : index
    %4 = vector.load %arg2[%c0_2, %c0_3] : memref<128x128xf32, #tpu.memory_space<vmem>>, vector<128x128xf32>
    %cst = arith.constant dense<0.000000e+00> : vector<16x128xf32>
    %5 = tpu.matmul %3, %4, %cst {dimension_numbers = #tpu.dot_dimension_numbers<[1], [0], [0], [1], [0, 0, 1, 1], [], []>} : vector<16x128xf32>, vector<128x128xf32>, vector<16x128xf32> -> vector<16x128xf32>
    %c0_4 = arith.constant 0 : index
    %c0_5 = arith.constant 0 : index
    %6 = vector.load %arg3[%c0_4, %c0_5] : memref<16x128xf32, #tpu.memory_space<vmem>>, vector<16x128xf32>
    tpu.vector_store %arg3[%c0_4, %c0_5], %5 {strides = array<i32>} : memref<16x128xf32, #tpu.memory_space<vmem>>, vector<16x128xf32>,
    %c0_6 = arith.constant 0 : index
    %c0_7 = arith.constant 0 : index
    %7 = vector.load %arg4[%c0_6, %c0_7] : memref<1x128xf32, #tpu.memory_space<vmem>>, vector<1x128xf32>
    %cst_8 = arith.constant dense<0.000000e+00> : vector<128xf32>
    %8 = vector.multi_reduction <add>, %5, %cst_8 [0] : vector<16x128xf32> to vector<128xf32>
    %9 = vector.shape_cast %8 : vector<128xf32> to vector<1x128xf32>
    %10 = arith.addf %7, %9 : vector<1x128xf32>
    %c0_9 = arith.constant 0 : index
    %c0_10 = arith.constant 0 : index
    %11 = vector.load %arg4[%c0_9, %c0_10] : memref<1x128xf32, #tpu.memory_space<vmem>>, vector<1x128xf32>
    tpu.vector_store %arg4[%c0_9, %c0_10], %10 {strides = array<i32>} : memref<1x128xf32, #tpu.memory_space<vmem>>, vector<1x128xf32>,
    %c0_11 = arith.constant 0 : index
    %c0_12 = arith.constant 0 : index
    %12 = vector.load %arg5[%c0_11, %c0_12] : memref<1x128xf32, #tpu.memory_space<vmem>>, vector<1x128xf32>
    %13 = arith.mulf %5, %5 : vector<16x128xf32>
    %cst_13 = arith.constant dense<0.000000e+00> : vector<128xf32>
    %14 = vector.multi_reduction <add>, %13, %cst_13 [0] : vector<16x128xf32> to vector<128xf32>
    %15 = vector.shape_cast %14 : vector<128xf32> to vector<1x128xf32>
    %16 = arith.addf %12, %15 : vector<1x128xf32>
    %c0_14 = arith.constant 0 : index
    %c0_15 = arith.constant 0 : index
    %17 = vector.load %arg5[%c0_14, %c0_15] : memref<1x128xf32, #tpu.memory_space<vmem>>, vector<1x128xf32>
    tpu.vector_store %arg5[%c0_14, %c0_15], %16 {strides = array<i32>} : memref<1x128xf32, #tpu.memory_space<vmem>>, vector<1x128xf32>,
    return
  }
  func.func @transform_0(%arg0: i32) -> (i32, i32) {
    %c0_i32 = arith.constant 0 : i32
    %c0_i32_0 = arith.constant 0 : i32
    return %arg0, %c0_i32 : i32, i32
  }
  func.func @transform_1(%arg0: i32) -> (i32, i32) {
    %c0_i32 = arith.constant 0 : i32
    %c0_i32_0 = arith.constant 0 : i32
    %c0_i32_1 = arith.constant 0 : i32
    return %c0_i32, %c0_i32_0 : i32, i32
  }
  func.func @transform_2(%arg0: i32) -> (i32, i32) {
    %c0_i32 = arith.constant 0 : i32
    %c0_i32_0 = arith.constant 0 : i32
    return %arg0, %c0_i32 : i32, i32
  }
  func.func @transform_3(%arg0: i32) -> (i32, i32) {
    %c0_i32 = arith.constant 0 : i32
    %c0_i32_0 = arith.constant 0 : i32
    %c0_i32_1 = arith.constant 0 : i32
    return %c0_i32, %c0_i32_0 : i32, i32
  }
  func.func @transform_4(%arg0: i32) -> (i32, i32) {
    %c0_i32 = arith.constant 0 : i32
    %c0_i32_0 = arith.constant 0 : i32
    %c0_i32_1 = arith.constant 0 : i32
    return %c0_i32, %c0_i32_0 : i32, i32
  }
}

module attributes {stable_mosaic.version = 11 : i64} {
  func.func @_mm_stats_kernel(%arg0: i32, %arg1: memref<16x384xf32, #tpu.memory_space<vmem>>, %arg2: memref<384x128xf32, #tpu.memory_space<vmem>>, %arg3: memref<16x128xf32, #tpu.memory_space<vmem>>, %arg4: memref<1x128xf32, #tpu.memory_space<vmem>>, %arg5: memref<1x128xf32, #tpu.memory_space<vmem>>) attributes {dimension_semantics = [#tpu.dimension_semantics<arbitrary>], iteration_bounds = array<i64: 1>, scalar_prefetch = 0 : i64, scratch_operands = 0 : i64, tpu.core_type = #tpu.core_type<tc>, window_params = [{transform_indices = @transform_0, window_bounds = array<i64: 16, 384>}, {pipeline_mode = #tpu.pipeline_mode<synchronous>, transform_indices = @transform_1, window_bounds = array<i64: 384, 128>}, {transform_indices = @transform_2, window_bounds = array<i64: 16, 128>}, {pipeline_mode = #tpu.pipeline_mode<synchronous>, transform_indices = @transform_3, window_bounds = array<i64: 1, 128>}, {pipeline_mode = #tpu.pipeline_mode<synchronous>, transform_indices = @transform_4, window_bounds = array<i64: 1, 128>}]} {
    %c0_i32 = arith.constant 0 : i32
    %0 = arith.cmpi eq, %arg0, %c0_i32 : i32
    %1 = arith.extui %0 : i1 to i32
    %c0_i32_0 = arith.constant 0 : i32
    %2 = arith.cmpi ne, %1, %c0_i32_0 : i32
    scf.if %2 {
      %cst_16 = arith.constant 0.000000e+00 : f32
      %18 = vector.broadcast %cst_16 : f32 to vector<1x128xf32>
      %c0_17 = arith.constant 0 : index
      %c0_18 = arith.constant 0 : index
      %19 = vector.load %arg4[%c0_17, %c0_18] : memref<1x128xf32, #tpu.memory_space<vmem>>, vector<1x128xf32>
      tpu.vector_store %arg4[%c0_17, %c0_18], %18 {strides = array<i32>} : memref<1x128xf32, #tpu.memory_space<vmem>>, vector<1x128xf32>,
      %cst_19 = arith.constant 0.000000e+00 : f32
      %20 = vector.broadcast %cst_19 : f32 to vector<1x128xf32>
      %c0_20 = arith.constant 0 : index
      %c0_21 = arith.constant 0 : index
      %21 = vector.load %arg5[%c0_20, %c0_21] : memref<1x128xf32, #tpu.memory_space<vmem>>, vector<1x128xf32>
      tpu.vector_store %arg5[%c0_20, %c0_21], %20 {strides = array<i32>} : memref<1x128xf32, #tpu.memory_space<vmem>>, vector<1x128xf32>,
    } else {
    }
    %c0 = arith.constant 0 : index
    %c0_1 = arith.constant 0 : index
    %3 = vector.load %arg1[%c0, %c0_1] : memref<16x384xf32, #tpu.memory_space<vmem>>, vector<16x384xf32>
    %c0_2 = arith.constant 0 : index
    %c0_3 = arith.constant 0 : index
    %4 = vector.load %arg2[%c0_2, %c0_3] : memref<384x128xf32, #tpu.memory_space<vmem>>, vector<384x128xf32>
    %cst = arith.constant dense<0.000000e+00> : vector<16x128xf32>
    %5 = tpu.matmul %3, %4, %cst {dimension_numbers = #tpu.dot_dimension_numbers<[1], [0], [0], [1], [0, 0, 1, 1], [], []>} : vector<16x384xf32>, vector<384x128xf32>, vector<16x128xf32> -> vector<16x128xf32>
    %c0_4 = arith.constant 0 : index
    %c0_5 = arith.constant 0 : index
    %6 = vector.load %arg3[%c0_4, %c0_5] : memref<16x128xf32, #tpu.memory_space<vmem>>, vector<16x128xf32>
    tpu.vector_store %arg3[%c0_4, %c0_5], %5 {strides = array<i32>} : memref<16x128xf32, #tpu.memory_space<vmem>>, vector<16x128xf32>,
    %c0_6 = arith.constant 0 : index
    %c0_7 = arith.constant 0 : index
    %7 = vector.load %arg4[%c0_6, %c0_7] : memref<1x128xf32, #tpu.memory_space<vmem>>, vector<1x128xf32>
    %cst_8 = arith.constant dense<0.000000e+00> : vector<128xf32>
    %8 = vector.multi_reduction <add>, %5, %cst_8 [0] : vector<16x128xf32> to vector<128xf32>
    %9 = vector.shape_cast %8 : vector<128xf32> to vector<1x128xf32>
    %10 = arith.addf %7, %9 : vector<1x128xf32>
    %c0_9 = arith.constant 0 : index
    %c0_10 = arith.constant 0 : index
    %11 = vector.load %arg4[%c0_9, %c0_10] : memref<1x128xf32, #tpu.memory_space<vmem>>, vector<1x128xf32>
    tpu.vector_store %arg4[%c0_9, %c0_10], %10 {strides = array<i32>} : memref<1x128xf32, #tpu.memory_space<vmem>>, vector<1x128xf32>,
    %c0_11 = arith.constant 0 : index
    %c0_12 = arith.constant 0 : index
    %12 = vector.load %arg5[%c0_11, %c0_12] : memref<1x128xf32, #tpu.memory_space<vmem>>, vector<1x128xf32>
    %13 = arith.mulf %5, %5 : vector<16x128xf32>
    %cst_13 = arith.constant dense<0.000000e+00> : vector<128xf32>
    %14 = vector.multi_reduction <add>, %13, %cst_13 [0] : vector<16x128xf32> to vector<128xf32>
    %15 = vector.shape_cast %14 : vector<128xf32> to vector<1x128xf32>
    %16 = arith.addf %12, %15 : vector<1x128xf32>
    %c0_14 = arith.constant 0 : index
    %c0_15 = arith.constant 0 : index
    %17 = vector.load %arg5[%c0_14, %c0_15] : memref<1x128xf32, #tpu.memory_space<vmem>>, vector<1x128xf32>
    tpu.vector_store %arg5[%c0_14, %c0_15], %16 {strides = array<i32>} : memref<1x128xf32, #tpu.memory_space<vmem>>, vector<1x128xf32>,
    return
  }
  func.func @transform_0(%arg0: i32) -> (i32, i32) {
    %c0_i32 = arith.constant 0 : i32
    %c0_i32_0 = arith.constant 0 : i32
    return %arg0, %c0_i32 : i32, i32
  }
  func.func @transform_1(%arg0: i32) -> (i32, i32) {
    %c0_i32 = arith.constant 0 : i32
    %c0_i32_0 = arith.constant 0 : i32
    %c0_i32_1 = arith.constant 0 : i32
    return %c0_i32, %c0_i32_0 : i32, i32
  }
  func.func @transform_2(%arg0: i32) -> (i32, i32) {
    %c0_i32 = arith.constant 0 : i32
    %c0_i32_0 = arith.constant 0 : i32
    return %arg0, %c0_i32 : i32, i32
  }
  func.func @transform_3(%arg0: i32) -> (i32, i32) {
    %c0_i32 = arith.constant 0 : i32
    %c0_i32_0 = arith.constant 0 : i32
    %c0_i32_1 = arith.constant 0 : i32
    return %c0_i32, %c0_i32_0 : i32, i32
  }
  func.func @transform_4(%arg0: i32) -> (i32, i32) {
    %c0_i32 = arith.constant 0 : i32
    %c0_i32_0 = arith.constant 0 : i32
    %c0_i32_1 = arith.constant 0 : i32
    return %c0_i32, %c0_i32_0 : i32, i32
  }
}

module attributes {stable_mosaic.version = 11 : i64} {
  func.func @_epilogue_kernel(%arg0: i32, %arg1: memref<8x128xf32, #tpu.memory_space<vmem>>, %arg2: memref<8x128xf32, #tpu.memory_space<vmem>>, %arg3: memref<1x128xf32, #tpu.memory_space<vmem>>, %arg4: memref<1x128xf32, #tpu.memory_space<vmem>>, %arg5: memref<1x128xf32, #tpu.memory_space<vmem>>, %arg6: memref<1x128xf32, #tpu.memory_space<vmem>>, %arg7: memref<8x128xf32, #tpu.memory_space<vmem>>) attributes {dimension_semantics = [#tpu.dimension_semantics<parallel>], iteration_bounds = array<i64: 1>, scalar_prefetch = 0 : i64, scratch_operands = 0 : i64, tpu.core_type = #tpu.core_type<tc>, window_params = [{transform_indices = @transform_0, window_bounds = array<i64: 8, 128>}, {transform_indices = @transform_1, window_bounds = array<i64: 8, 128>}, {pipeline_mode = #tpu.pipeline_mode<synchronous>, transform_indices = @transform_2, window_bounds = array<i64: 1, 128>}, {pipeline_mode = #tpu.pipeline_mode<synchronous>, transform_indices = @transform_3, window_bounds = array<i64: 1, 128>}, {pipeline_mode = #tpu.pipeline_mode<synchronous>, transform_indices = @transform_4, window_bounds = array<i64: 1, 128>}, {pipeline_mode = #tpu.pipeline_mode<synchronous>, transform_indices = @transform_5, window_bounds = array<i64: 1, 128>}, {transform_indices = @transform_6, window_bounds = array<i64: 8, 128>}]} {
    %c0 = arith.constant 0 : index
    %c0_0 = arith.constant 0 : index
    %0 = vector.load %arg1[%c0, %c0_0] : memref<8x128xf32, #tpu.memory_space<vmem>>, vector<8x128xf32>
    %c0_1 = arith.constant 0 : index
    %c0_2 = arith.constant 0 : index
    %1 = vector.load %arg3[%c0_1, %c0_2] : memref<1x128xf32, #tpu.memory_space<vmem>>, vector<1x128xf32>
    %2 = vector.broadcast %1 : vector<1x128xf32> to vector<8x128xf32>
    %3 = arith.mulf %0, %2 : vector<8x128xf32>
    %c0_3 = arith.constant 0 : index
    %c0_4 = arith.constant 0 : index
    %4 = vector.load %arg4[%c0_3, %c0_4] : memref<1x128xf32, #tpu.memory_space<vmem>>, vector<1x128xf32>
    %5 = vector.broadcast %4 : vector<1x128xf32> to vector<8x128xf32>
    %6 = arith.addf %3, %5 : vector<8x128xf32>
    %c0_5 = arith.constant 0 : index
    %c0_6 = arith.constant 0 : index
    %7 = vector.load %arg2[%c0_5, %c0_6] : memref<8x128xf32, #tpu.memory_space<vmem>>, vector<8x128xf32>
    %c0_7 = arith.constant 0 : index
    %c0_8 = arith.constant 0 : index
    %8 = vector.load %arg5[%c0_7, %c0_8] : memref<1x128xf32, #tpu.memory_space<vmem>>, vector<1x128xf32>
    %9 = vector.broadcast %8 : vector<1x128xf32> to vector<8x128xf32>
    %10 = arith.mulf %7, %9 : vector<8x128xf32>
    %11 = arith.addf %6, %10 : vector<8x128xf32>
    %c0_9 = arith.constant 0 : index
    %c0_10 = arith.constant 0 : index
    %12 = vector.load %arg6[%c0_9, %c0_10] : memref<1x128xf32, #tpu.memory_space<vmem>>, vector<1x128xf32>
    %13 = vector.broadcast %12 : vector<1x128xf32> to vector<8x128xf32>
    %14 = arith.addf %11, %13 : vector<8x128xf32>
    %cst = arith.constant 0.000000e+00 : f32
    %15 = vector.broadcast %cst : f32 to vector<8x128xf32>
    %16 = arith.cmpf ogt, %14, %15 : vector<8x128xf32>
    %cst_11 = arith.constant 0.00999999977 : f32
    %17 = vector.broadcast %cst_11 : f32 to vector<8x128xf32>
    %18 = arith.mulf %17, %14 : vector<8x128xf32>
    %19 = arith.select %16, %14, %18 : vector<8x128xi1>, vector<8x128xf32>
    %c0_12 = arith.constant 0 : index
    %c0_13 = arith.constant 0 : index
    %20 = vector.load %arg7[%c0_12, %c0_13] : memref<8x128xf32, #tpu.memory_space<vmem>>, vector<8x128xf32>
    tpu.vector_store %arg7[%c0_12, %c0_13], %19 {strides = array<i32>} : memref<8x128xf32, #tpu.memory_space<vmem>>, vector<8x128xf32>,
    return
  }
  func.func @transform_0(%arg0: i32) -> (i32, i32) {
    %c0_i32 = arith.constant 0 : i32
    %c0_i32_0 = arith.constant 0 : i32
    return %arg0, %c0_i32 : i32, i32
  }
  func.func @transform_1(%arg0: i32) -> (i32, i32) {
    %c0_i32 = arith.constant 0 : i32
    %c0_i32_0 = arith.constant 0 : i32
    return %arg0, %c0_i32 : i32, i32
  }
  func.func @transform_2(%arg0: i32) -> (i32, i32) {
    %c0_i32 = arith.constant 0 : i32
    %c0_i32_0 = arith.constant 0 : i32
    %c0_i32_1 = arith.constant 0 : i32
    return %c0_i32, %c0_i32_0 : i32, i32
  }
  func.func @transform_3(%arg0: i32) -> (i32, i32) {
    %c0_i32 = arith.constant 0 : i32
    %c0_i32_0 = arith.constant 0 : i32
    %c0_i32_1 = arith.constant 0 : i32
    return %c0_i32, %c0_i32_0 : i32, i32
  }
  func.func @transform_4(%arg0: i32) -> (i32, i32) {
    %c0_i32 = arith.constant 0 : i32
    %c0_i32_0 = arith.constant 0 : i32
    %c0_i32_1 = arith.constant 0 : i32
    return %c0_i32, %c0_i32_0 : i32, i32
  }
  func.func @transform_5(%arg0: i32) -> (i32, i32) {
    %c0_i32 = arith.constant 0 : i32
    %c0_i32_0 = arith.constant 0 : i32
    %c0_i32_1 = arith.constant 0 : i32
    return %c0_i32, %c0_i32_0 : i32, i32
  }
  func.func @transform_6(%arg0: i32) -> (i32, i32) {
    %c0_i32 = arith.constant 0 : i32
    %c0_i32_0 = arith.constant 0 : i32
    return %arg0, %c0_i32 : i32, i32
  }
}

module attributes {stable_mosaic.version = 11 : i64} {
  func.func @kernel(%arg0: i32, %arg1: memref<8x384xf32, #tpu.memory_space<vmem>>, %arg2: memref<384x128xf32, #tpu.memory_space<vmem>>, %arg3: memref<1x384xf32, #tpu.memory_space<vmem>>, %arg4: memref<1x384xf32, #tpu.memory_space<vmem>>, %arg5: memref<8x128xf32, #tpu.memory_space<vmem>>, %arg6: memref<1x128xf32, #tpu.memory_space<vmem>>, %arg7: memref<1x128xf32, #tpu.memory_space<vmem>>) attributes {dimension_semantics = [#tpu.dimension_semantics<arbitrary>], iteration_bounds = array<i64: 1>, scalar_prefetch = 0 : i64, scratch_operands = 0 : i64, tpu.core_type = #tpu.core_type<tc>, window_params = [{transform_indices = @transform_0, window_bounds = array<i64: 8, 384>}, {pipeline_mode = #tpu.pipeline_mode<synchronous>, transform_indices = @transform_1, window_bounds = array<i64: 384, 128>}, {pipeline_mode = #tpu.pipeline_mode<synchronous>, transform_indices = @transform_2, window_bounds = array<i64: 1, 384>}, {pipeline_mode = #tpu.pipeline_mode<synchronous>, transform_indices = @transform_3, window_bounds = array<i64: 1, 384>}, {transform_indices = @transform_4, window_bounds = array<i64: 8, 128>}, {pipeline_mode = #tpu.pipeline_mode<synchronous>, transform_indices = @transform_5, window_bounds = array<i64: 1, 128>}, {pipeline_mode = #tpu.pipeline_mode<synchronous>, transform_indices = @transform_6, window_bounds = array<i64: 1, 128>}]} {
    %c0_i32 = arith.constant 0 : i32
    %0 = arith.cmpi eq, %arg0, %c0_i32 : i32
    %1 = arith.extui %0 : i1 to i32
    %c0_i32_0 = arith.constant 0 : i32
    %2 = arith.cmpi ne, %1, %c0_i32_0 : i32
    scf.if %2 {
      %cst_22 = arith.constant 0.000000e+00 : f32
      %29 = vector.broadcast %cst_22 : f32 to vector<1x128xf32>
      %c0_23 = arith.constant 0 : index
      %c0_24 = arith.constant 0 : index
      %30 = vector.load %arg6[%c0_23, %c0_24] : memref<1x128xf32, #tpu.memory_space<vmem>>, vector<1x128xf32>
      tpu.vector_store %arg6[%c0_23, %c0_24], %29 {strides = array<i32>} : memref<1x128xf32, #tpu.memory_space<vmem>>, vector<1x128xf32>,
      %cst_25 = arith.constant 0.000000e+00 : f32
      %31 = vector.broadcast %cst_25 : f32 to vector<1x128xf32>
      %c0_26 = arith.constant 0 : index
      %c0_27 = arith.constant 0 : index
      %32 = vector.load %arg7[%c0_26, %c0_27] : memref<1x128xf32, #tpu.memory_space<vmem>>, vector<1x128xf32>
      tpu.vector_store %arg7[%c0_26, %c0_27], %31 {strides = array<i32>} : memref<1x128xf32, #tpu.memory_space<vmem>>, vector<1x128xf32>,
    } else {
    }
    %c0 = arith.constant 0 : index
    %c0_1 = arith.constant 0 : index
    %3 = vector.load %arg1[%c0, %c0_1] : memref<8x384xf32, #tpu.memory_space<vmem>>, vector<8x384xf32>
    %c0_2 = arith.constant 0 : index
    %c0_3 = arith.constant 0 : index
    %4 = vector.load %arg3[%c0_2, %c0_3] : memref<1x384xf32, #tpu.memory_space<vmem>>, vector<1x384xf32>
    %5 = vector.broadcast %4 : vector<1x384xf32> to vector<8x384xf32>
    %6 = arith.mulf %3, %5 : vector<8x384xf32>
    %c0_4 = arith.constant 0 : index
    %c0_5 = arith.constant 0 : index
    %7 = vector.load %arg4[%c0_4, %c0_5] : memref<1x384xf32, #tpu.memory_space<vmem>>, vector<1x384xf32>
    %8 = vector.broadcast %7 : vector<1x384xf32> to vector<8x384xf32>
    %9 = arith.addf %6, %8 : vector<8x384xf32>
    %cst = arith.constant 0.000000e+00 : f32
    %10 = vector.broadcast %cst : f32 to vector<8x384xf32>
    %11 = arith.cmpf ogt, %9, %10 : vector<8x384xf32>
    %cst_6 = arith.constant 0.00999999977 : f32
    %12 = vector.broadcast %cst_6 : f32 to vector<8x384xf32>
    %13 = arith.mulf %12, %9 : vector<8x384xf32>
    %14 = arith.select %11, %9, %13 : vector<8x384xi1>, vector<8x384xf32>
    %c0_7 = arith.constant 0 : index
    %c0_8 = arith.constant 0 : index
    %15 = vector.load %arg2[%c0_7, %c0_8] : memref<384x128xf32, #tpu.memory_space<vmem>>, vector<384x128xf32>
    %cst_9 = arith.constant dense<0.000000e+00> : vector<8x128xf32>
    %16 = tpu.matmul %14, %15, %cst_9 {dimension_numbers = #tpu.dot_dimension_numbers<[1], [0], [0], [1], [0, 0, 1, 1], [], []>} : vector<8x384xf32>, vector<384x128xf32>, vector<8x128xf32> -> vector<8x128xf32>
    %c0_10 = arith.constant 0 : index
    %c0_11 = arith.constant 0 : index
    %17 = vector.load %arg5[%c0_10, %c0_11] : memref<8x128xf32, #tpu.memory_space<vmem>>, vector<8x128xf32>
    tpu.vector_store %arg5[%c0_10, %c0_11], %16 {strides = array<i32>} : memref<8x128xf32, #tpu.memory_space<vmem>>, vector<8x128xf32>,
    %c0_12 = arith.constant 0 : index
    %c0_13 = arith.constant 0 : index
    %18 = vector.load %arg6[%c0_12, %c0_13] : memref<1x128xf32, #tpu.memory_space<vmem>>, vector<1x128xf32>
    %cst_14 = arith.constant dense<0.000000e+00> : vector<128xf32>
    %19 = vector.multi_reduction <add>, %16, %cst_14 [0] : vector<8x128xf32> to vector<128xf32>
    %20 = vector.shape_cast %19 : vector<128xf32> to vector<1x128xf32>
    %21 = arith.addf %18, %20 : vector<1x128xf32>
    %c0_15 = arith.constant 0 : index
    %c0_16 = arith.constant 0 : index
    %22 = vector.load %arg6[%c0_15, %c0_16] : memref<1x128xf32, #tpu.memory_space<vmem>>, vector<1x128xf32>
    tpu.vector_store %arg6[%c0_15, %c0_16], %21 {strides = array<i32>} : memref<1x128xf32, #tpu.memory_space<vmem>>, vector<1x128xf32>,
    %c0_17 = arith.constant 0 : index
    %c0_18 = arith.constant 0 : index
    %23 = vector.load %arg7[%c0_17, %c0_18] : memref<1x128xf32, #tpu.memory_space<vmem>>, vector<1x128xf32>
    %24 = arith.mulf %16, %16 : vector<8x128xf32>
    %cst_19 = arith.constant dense<0.000000e+00> : vector<128xf32>
    %25 = vector.multi_reduction <add>, %24, %cst_19 [0] : vector<8x128xf32> to vector<128xf32>
    %26 = vector.shape_cast %25 : vector<128xf32> to vector<1x128xf32>
    %27 = arith.addf %23, %26 : vector<1x128xf32>
    %c0_20 = arith.constant 0 : index
    %c0_21 = arith.constant 0 : index
    %28 = vector.load %arg7[%c0_20, %c0_21] : memref<1x128xf32, #tpu.memory_space<vmem>>, vector<1x128xf32>
    tpu.vector_store %arg7[%c0_20, %c0_21], %27 {strides = array<i32>} : memref<1x128xf32, #tpu.memory_space<vmem>>, vector<1x128xf32>,
    return
  }
  func.func @transform_0(%arg0: i32) -> (i32, i32) {
    %c0_i32 = arith.constant 0 : i32
    %c0_i32_0 = arith.constant 0 : i32
    return %arg0, %c0_i32 : i32, i32
  }
  func.func @transform_1(%arg0: i32) -> (i32, i32) {
    %c0_i32 = arith.constant 0 : i32
    %c0_i32_0 = arith.constant 0 : i32
    %c0_i32_1 = arith.constant 0 : i32
    return %c0_i32, %c0_i32_0 : i32, i32
  }
  func.func @transform_2(%arg0: i32) -> (i32, i32) {
    %c0_i32 = arith.constant 0 : i32
    %c0_i32_0 = arith.constant 0 : i32
    %c0_i32_1 = arith.constant 0 : i32
    return %c0_i32, %c0_i32_0 : i32, i32
  }
  func.func @transform_3(%arg0: i32) -> (i32, i32) {
    %c0_i32 = arith.constant 0 : i32
    %c0_i32_0 = arith.constant 0 : i32
    %c0_i32_1 = arith.constant 0 : i32
    return %c0_i32, %c0_i32_0 : i32, i32
  }
  func.func @transform_4(%arg0: i32) -> (i32, i32) {
    %c0_i32 = arith.constant 0 : i32
    %c0_i32_0 = arith.constant 0 : i32
    return %arg0, %c0_i32 : i32, i32
  }
  func.func @transform_5(%arg0: i32) -> (i32, i32) {
    %c0_i32 = arith.constant 0 : i32
    %c0_i32_0 = arith.constant 0 : i32
    %c0_i32_1 = arith.constant 0 : i32
    return %c0_i32, %c0_i32_0 : i32, i32
  }
  func.func @transform_6(%arg0: i32) -> (i32, i32) {
    %c0_i32 = arith.constant 0 : i32
    %c0_i32_0 = arith.constant 0 : i32
    %c0_i32_1 = arith.constant 0 : i32
    return %c0_i32, %c0_i32_0 : i32, i32
  }
}

</mosaic_0001>

<bundles_post_ra>
// kernel: encoder_block_forward.5
= control target key start
LH: loop header
LB: loop body
LE: loop exit
PB: predicated region body
PF: predicated region fallthrough
CT: control target
= control target key end

     0   :  { %s628_s1 = inlined_call_operand.vmem [shape: f32[384,128], index: 1, kind: input, shape index: {}]   ;;  %s629_s0 = inlined_call_operand.vmem [shape: f32[16,384], index: 0, kind: input, shape index: {}]   ;;  %s630_s3 = inlined_call_operand.vmem [shape: f32[1,128], index: 3, kind: output, shape index: {1}]   ;;  %s631_s4 = inlined_call_operand.vmem [shape: f32[1,128], index: 4, kind: output, shape index: {2}]   ;;  %s632_s2 = inlined_call_operand.vmem [shape: f32[16,128], index: 2, kind: output, shape index: {0}]  }
   0x1   :  { %v42_v0 = vld [vmem:[%s628_s1 + $0x80] sm:$0xff]  ;;  %v43_v1 = vld [vmem:[%s628_s1 + $0x88] sm:$0xff]  ;;  %v44_v9 = vld [vmem:[%s628_s1 + $0x90] sm:$0xff] }
   0x2   :  { %v26_v2 = vld [vmem:[%s628_s1] sm:$0xff]  ;;  %v351_v3 = vpack.c.bf16 %v43_v1, %v42_v0  ;;  %v27_v4 = vld [vmem:[%s628_s1 + $0x8] sm:$0xff]  ;;  %v45_v10 = vld [vmem:[%s628_s1 + $0x98] sm:$0xff] }
   0x3   :  { %v58_v5 = vld [vmem:[%s628_s1 + $0x100] sm:$0xff]  ;;  %v59_v6 = vld [vmem:[%s628_s1 + $0x108] sm:$0xff]  ;;  %v353_v7 = vpack.c.bf16 %v27_v4, %v26_v2  ;;  %v28_v11 = vld [vmem:[%s628_s1 + $0x10] sm:$0xff]  ;;  %v355_v12 = vpack.c.bf16 %v45_v10, %v44_v9 }
   0x4   :  { %v383_v8 = vpack.c.bf16 %v59_v6, %v58_v5  ;;  %352 = vmatprep.subr.bf16.mxu0 %v351_v3  ;;  %v29_v13 = vld [vmem:[%s628_s1 + $0x18] sm:$0xff]  ;;  %v60_v14 = vld [vmem:[%s628_s1 + $0x110] sm:$0xff]  ;;  %v46_v18 = vld [vmem:[%s628_s1 + $0xa0] sm:$0xff] }
   0x5   :  { %v61_v15 = vld [vmem:[%s628_s1 + $0x118] sm:$0xff]  ;;  %354 = vmatpush3.bf16.msra.mxu0 %v353_v7  ;;  %v357_v16 = vpack.c.bf16 %v29_v13, %v28_v11  ;;  %v47_v19 = vld [vmem:[%s628_s1 + $0xa8] sm:$0xff]  ;;  %v30_v20 = vld [vmem:[%s628_s1 + $0x20] sm:$0xff] }
   0x6   :  { %384 = vmatprep.subr.bf16.mxu1 %v383_v8  ;;  %v387_v17 = vpack.c.bf16 %v61_v15, %v60_v14  ;;  %356 = vmatprep.subr.bf16.mxu0 %v355_v12  ;;  %v359_v21 = vpack.c.bf16 %v47_v19, %v46_v18  ;;  %v31_v22 = vld [vmem:[%s628_s1 + $0x28] sm:$0xff]  ;;  %v62_v23 = vld [vmem:[%s628_s1 + $0x120] sm:$0xff]  ;;  %v48_v26 = vld [vmem:[%s628_s1 + $0xb0] sm:$0xff]  ;;  %v416_v14 = vmov 0.0  }
   0x7   :  { %386 = vmatpush3.bf16.msra.mxu1 %v383_v8  ;;  %v63_v24 = vld [vmem:[%s628_s1 + $0x128] sm:$0xff]  ;;  %v49_v27 = vld [vmem:[%s628_s1 + $0xb8] sm:$0xff]  ;;  %v64_v28 = vld [vmem:[%s628_s1 + $0x130] sm:$0xff]  ;;  %v361_v30 = vpack.c.bf16 %v31_v22, %v30_v20  ;;  %18 = vst [vmem:[%s630_s3] sm:$0x1] %v416_v14 }
   0x8   :  { %388 = vmatprep.subr.bf16.mxu1 %v387_v17  ;;  %v391_v25 = vpack.c.bf16 %v63_v24, %v62_v23  ;;  %v65_v29 = vld [vmem:[%s628_s1 + $0x138] sm:$0xff]  ;;  %v363_v31 = vpack.c.bf16 %v49_v27, %v48_v26  ;;  %v32_v32 = vld [vmem:[%s628_s1 + $0x30] sm:$0xff]  ;;  %v50_v35 = vld [vmem:[%s628_s1 + $0xc0] sm:$0xff]  ;;  %19 = vst [vmem:[%s631_s4] sm:$0x1] %v416_v14 }
   0x9   :  { %358 = vmatpush3.bf16.msra.mxu0 %v357_v16  ;;  %v33_v33 = vld [vmem:[%s628_s1 + $0x38] sm:$0xff]  ;;  %v395_v34 = vpack.c.bf16 %v65_v29, %v64_v28  ;;  %v51_v36 = vld [vmem:[%s628_s1 + $0xc8] sm:$0xff]  ;;  %v66_v37 = vld [vmem:[%s628_s1 + $0x140] sm:$0xff] }
   0xa   :  { %360 = vmatprep.subr.bf16.mxu0 %v359_v21  ;;  %v67_v38 = vld [vmem:[%s628_s1 + $0x148] sm:$0xff]  ;;  %v365_v39 = vpack.c.bf16 %v33_v33, %v32_v32  ;;  %v367_v40 = vpack.c.bf16 %v51_v36, %v50_v35  ;;  %v34_v41 = vld [vmem:[%s628_s1 + $0x40] sm:$0xff]  ;;  %v52_v44 = vld [vmem:[%s628_s1 + $0xd0] sm:$0xff] }
   0xb   :  { %390 = vmatpush3.bf16.msra.mxu1 %v387_v17  ;;  %v35_v42 = vld [vmem:[%s628_s1 + $0x48] sm:$0xff]  ;;  %v399_v43 = vpack.c.bf16 %v67_v38, %v66_v37  ;;  %v53_v45 = vld [vmem:[%s628_s1 + $0xd8] sm:$0xff]  ;;  %v68_v46 = vld [vmem:[%s628_s1 + $0x150] sm:$0xff] }
   0xc   :  { %392 = vmatprep.subr.bf16.mxu1 %v391_v25  ;;  %v69_v47 = vld [vmem:[%s628_s1 + $0x158] sm:$0xff]  ;;  %v369_v48 = vpack.c.bf16 %v35_v42, %v34_v41  ;;  %v21_v49 = vld [vmem:[%s629_s0 + $0x8] sm:$0xff]  ;;  %v22_v50 = vld [vmem:[%s629_s0 + $0x10] sm:$0xff]  ;;  %v371_v51 = vpack.c.bf16 %v53_v45, %v52_v44 }
   0xd   :  { %362 = vmatpush3.bf16.msra.mxu0 %v361_v30  ;;  %v36_v52 = vld [vmem:[%s628_s1 + $0x50] sm:$0xff]  ;;  %v37_v53 = vld [vmem:[%s628_s1 + $0x58] sm:$0xff]  ;;  %v403_v54 = vpack.c.bf16 %v69_v47, %v68_v46  ;;  %v54_v55 = vld [vmem:[%s628_s1 + $0xe0] sm:$0xff]  ;;  %138 = vmatprep.mubr.f32.mxu0 %v21_v49 }
   0xe   :  { %364 = vmatprep.subr.bf16.mxu0 %v363_v31  ;;  %v55_v56 = vld [vmem:[%s628_s1 + $0xe8] sm:$0xff]  ;;  %v70_v57 = vld [vmem:[%s628_s1 + $0x160] sm:$0xff]  ;;  %348 = vmatprep.mubr.f32.mxu1 %v22_v50  ;;  %v373_v59 = vpack.c.bf16 %v37_v53, %v36_v52  ;;  %v56_v0 = vld [vmem:[%s628_s1 + $0xf0] sm:$0xff] }
   0xf   :  { %394 = vmatpush3.bf16.msra.mxu1 %v391_v25  ;;  %v71_v58 = vld [vmem:[%s628_s1 + $0x168] sm:$0xff]  ;;  %v375_v60 = vpack.c.bf16 %v55_v56, %v54_v55  ;;  %v38_v61 = vld [vmem:[%s628_s1 + $0x60] sm:$0xff]  ;;  %v57_v1 = vld [vmem:[%s628_s1 + $0xf8] sm:$0xff] }
  0x10   :  { %396 = vmatprep.subr.bf16.mxu1 %v395_v34  ;;  %v39_v62 = vld [vmem:[%s628_s1 + $0x68] sm:$0xff]  ;;  %v407_v63 = vpack.c.bf16 %v71_v58, %v70_v57  ;;  %v72_v2 = vld [vmem:[%s628_s1 + $0x170] sm:$0xff]  ;;  %v73_v3 = vld [vmem:[%s628_s1 + $0x178] sm:$0xff]  ;;  %v379_v5 = vpack.c.bf16 %v57_v1, %v56_v0 }
  0x11   :  { %366 = vmatpush3.bf16.msra.mxu0 %v365_v39  ;;  %v377_v4 = vpack.c.bf16 %v39_v62, %v38_v61  ;;  %v40_v6 = vld [vmem:[%s628_s1 + $0x70] sm:$0xff]  ;;  %v41_v7 = vld [vmem:[%s628_s1 + $0x78] sm:$0xff]  ;;  %v411_v8 = vpack.c.bf16 %v73_v3, %v72_v2  ;;  %v20_v10 = vld [vmem:[%s629_s0] sm:$0xff] }
  0x12   :  { %368 = vmatprep.subr.bf16.mxu0 %v367_v40  ;;  %v381_v9 = vpack.c.bf16 %v41_v7, %v40_v6  ;;  %v25_v11 = vld [vmem:[%s629_s0 + $0x28] sm:$0xff]  ;;  %v24_v12 = vld [vmem:[%s629_s0 + $0x20] sm:$0xff]  ;;  %v23_v13 = vld [vmem:[%s629_s0 + $0x18] sm:$0xff] }
  0x13   :  { %398 = vmatpush3.bf16.msra.mxu1 %v395_v34  ;;  %v226_v38 = vld [vmem:[%s630_s3] sm:$0x1] }
  0x14   :  { %400 = vmatprep.subr.bf16.mxu1 %v399_v43  ;;  %v236_v41 = vld [vmem:[%s631_s4] sm:$0x1] }
  0x15   :  { %370 = vmatpush3.bf16.msra.mxu0 %v369_v48 }
  0x16   :  { %372 = vmatprep.subr.bf16.mxu0 %v371_v51 }
  0x17   :  { %402 = vmatpush3.bf16.msra.mxu1 %v399_v43 }
  0x18   :  { %404 = vmatprep.subr.bf16.mxu1 %v403_v54 }
  0x19   :  { %374 = vmatpush3.bf16.msra.mxu0 %v373_v59 }
  0x1a   :  { %376 = vmatprep.subr.bf16.mxu0 %v375_v60 }
  0x1b   :  { %406 = vmatpush3.bf16.msra.mxu1 %v403_v54 }
  0x1c   :  { %408 = vmatprep.subr.bf16.mxu1 %v407_v63 }
  0x1d   :  { %378 = vmatpush3.bf16.msra.mxu0 %v377_v4 }
  0x1e   :  { %380 = vmatprep.subr.bf16.mxu0 %v379_v5 }
  0x1f   :  { %410 = vmatpush3.bf16.msra.mxu1 %v407_v63 }
  0x20   :  { %412 = vmatprep.subr.bf16.mxu1 %v411_v8 }
  0x21   :  { %382 = vmatpush3.bf16.msra.mxu0 %v381_v9 }
  0x23   :  { %414 = vmatpush3.bf16.msra.mxu1 %v411_v8 }
  0x24   :  { %139 = vmatmul.mubr.f32.vlgmr.msra.gmra.mrb[0].mxu0 %v20_v10 }
  0x25   :  { %143 = vmatprep.mubr.f32.mxu0 %v24_v12 }
  0x26   :  { %349 = vmatmul.mubr.f32.vlgmr.msra.gmra.mrb[0].mxu1 %v25_v11 }
  0x28   :  { %144 = vmatmul.mubr.f32.gmra.mrb[2].mxu0 %v23_v13 }
  0xf7   :  { %v292_v15 = vpop.f32.mrb[0].mxu0 }
  0xf8   :  { %v293_v16 = vpop.f32.mrb[1].mxu0 }
  0xf9   :  { %v350_v17 = vpop.f32.mrb[0].mxu1  ;;  %v294_v18 = vadd.f32 %v293_v16, %v292_v15 }
  0xfa   :  { %v215_v19 = vpop.f32.mrb[1].mxu1 }
  0xfb   :  { %v216_v20 = vadd.f32 %v294_v18, %v215_v19  ;;  %v295_v21 = vpop.f32.mrb[2].mxu0 }
  0xfc   :  { %v296_v22 = vpop.f32.mrb[3].mxu0 }
  0xfd   :  { %224 = vst [vmem:[%s632_s2] sm:$0xff] %v216_v20  ;;  %v297_v23 = vadd.f32 %v296_v22, %v295_v21  ;;  %v237_v25 = vmul.f32 %v216_v20, %v216_v20 }
  0xff   :  { %v221_v24 = vadd.f32 %v350_v17, %v297_v23 }
 0x101   :  { %225 = vst [vmem:[%s632_s2 + $0x8] sm:$0xff] %v221_v24  ;;  %v227_v26 = vadd.f32 %v221_v24, %v216_v20  ;;  %v238_v27 = vmul.f32 %v221_v24, %v221_v24 }
 0x103   :  { %v228_v28 = vrot.slane %v227_v26, 4  ;;  %v239_v29 = vadd.f32 %v238_v27, %v237_v25 }
 0x105   :  { %v229_v30 = vadd.f32 %v228_v28, %v227_v26  ;;  %v240_v31 = vrot.slane %v239_v29, 4 }
 0x107   :  { %v230_v32 = vrot.slane %v229_v30, 2  ;;  %v241_v33 = vadd.f32 %v240_v31, %v239_v29 }
 0x109   :  { %v231_v34 = vadd.f32 %v230_v32, %v229_v30  ;;  %v242_v35 = vrot.slane %v241_v33, 2 }
 0x10b   :  { %v232_v36 = vrot.slane %v231_v34, 1  ;;  %v243_v37 = vadd.f32 %v242_v35, %v241_v33 }
 0x10d   :  { %v233_v39 = vadd.f32 %v232_v36, %v231_v34  ;;  %v244_v40 = vrot.slane %v243_v37, 1 }
 0x10f   :  { %v234_v42 = vadd.f32 %v233_v39, %v226_v38  ;;  %v245_v43 = vadd.f32 %v244_v40, %v243_v37 }
 0x111   :  { %235 = vst [vmem:[%s630_s3] sm:$0x1] %v234_v42  ;;  %v246_v44 = vadd.f32 %v245_v43, %v236_v41 }
 0x113   :  { %247 = vst [vmem:[%s631_s4] sm:$0x1] %v246_v44 }

// kernel: encoder_block_forward.4
= control target key start
LH: loop header
LB: loop body
LE: loop exit
PB: predicated region body
PF: predicated region fallthrough
CT: control target
= control target key end

     0   :  { %v235_v26 = vmov 0.0   ;;  %s339_s1 = inlined_call_operand.vmem [shape: f32[128,128], index: 1, kind: input, shape index: {}]   ;;  %s340_s0 = inlined_call_operand.vmem [shape: f32[16,128], index: 0, kind: input, shape index: {}]   ;;  %s341_s3 = inlined_call_operand.vmem [shape: f32[1,128], index: 3, kind: output, shape index: {1}]   ;;  %s342_s4 = inlined_call_operand.vmem [shape: f32[1,128], index: 4, kind: output, shape index: {2}]   ;;  %s343_s2 = inlined_call_operand.vmem [shape: f32[16,128], index: 2, kind: output, shape index: {0}]  }
   0x1   :  { %v22_v0 = vld [vmem:[%s339_s1] sm:$0xff]  ;;  %v23_v1 = vld [vmem:[%s339_s1 + $0x8] sm:$0xff]  ;;  %v24_v2 = vld [vmem:[%s339_s1 + $0x10] sm:$0xff]  ;;  %18 = vst [vmem:[%s341_s3] sm:$0x1] %v235_v26 }
   0x2   :  { %v202_v3 = vpack.c.bf16 %v23_v1, %v22_v0  ;;  %v25_v4 = vld [vmem:[%s339_s1 + $0x18] sm:$0xff]  ;;  %v26_v6 = vld [vmem:[%s339_s1 + $0x20] sm:$0xff]  ;;  %v27_v7 = vld [vmem:[%s339_s1 + $0x28] sm:$0xff]  ;;  %19 = vst [vmem:[%s342_s4] sm:$0x1] %v235_v26 }
   0x3   :  { %v206_v5 = vpack.c.bf16 %v25_v4, %v24_v2  ;;  %v210_v8 = vpack.c.bf16 %v27_v7, %v26_v6  ;;  %v20_v9 = vld [vmem:[%s340_s0] sm:$0xff]  ;;  %v28_v10 = vld [vmem:[%s339_s1 + $0x30] sm:$0xff]  ;;  %v29_v11 = vld [vmem:[%s339_s1 + $0x38] sm:$0xff] }
   0x4   :  { %203 = vmatprep.subr.bf16.mxu0 %v202_v3  ;;  %199 = vmatprep.mubr.f32.mxu0 %v20_v9  ;;  %v214_v12 = vpack.c.bf16 %v29_v11, %v28_v10  ;;  %v30_v13 = vld [vmem:[%s339_s1 + $0x40] sm:$0xff]  ;;  %v31_v14 = vld [vmem:[%s339_s1 + $0x48] sm:$0xff]  ;;  %v32_v16 = vld [vmem:[%s339_s1 + $0x50] sm:$0xff] }
   0x5   :  { %205 = vmatpush3.bf16.msra.mxu0 %v202_v3  ;;  %v218_v15 = vpack.c.bf16 %v31_v14, %v30_v13  ;;  %v33_v17 = vld [vmem:[%s339_s1 + $0x58] sm:$0xff]  ;;  %v34_v19 = vld [vmem:[%s339_s1 + $0x60] sm:$0xff]  ;;  %v35_v20 = vld [vmem:[%s339_s1 + $0x68] sm:$0xff] }
   0x6   :  { %207 = vmatprep.subr.bf16.mxu0 %v206_v5  ;;  %v222_v18 = vpack.c.bf16 %v33_v17, %v32_v16  ;;  %v226_v21 = vpack.c.bf16 %v35_v20, %v34_v19  ;;  %v36_v22 = vld [vmem:[%s339_s1 + $0x70] sm:$0xff]  ;;  %v37_v23 = vld [vmem:[%s339_s1 + $0x78] sm:$0xff]  ;;  %v21_v25 = vld [vmem:[%s340_s0 + $0x8] sm:$0xff] }
   0x7   :  { %v230_v24 = vpack.c.bf16 %v37_v23, %v36_v22 }
   0x8   :  { %v115_v42 = vld [vmem:[%s341_s3] sm:$0x1] }
   0x9   :  { %209 = vmatpush3.bf16.msra.mxu0 %v206_v5  ;;  %v125_v45 = vld [vmem:[%s342_s4] sm:$0x1] }
   0xa   :  { %211 = vmatprep.subr.bf16.mxu0 %v210_v8 }
   0xd   :  { %213 = vmatpush3.bf16.msra.mxu0 %v210_v8 }
   0xe   :  { %215 = vmatprep.subr.bf16.mxu0 %v214_v12 }
  0x11   :  { %217 = vmatpush3.bf16.msra.mxu0 %v214_v12 }
  0x12   :  { %219 = vmatprep.subr.bf16.mxu0 %v218_v15 }
  0x15   :  { %221 = vmatpush3.bf16.msra.mxu0 %v218_v15 }
  0x16   :  { %223 = vmatprep.subr.bf16.mxu0 %v222_v18 }
  0x19   :  { %225 = vmatpush3.bf16.msra.mxu0 %v222_v18 }
  0x1a   :  { %227 = vmatprep.subr.bf16.mxu0 %v226_v21 }
  0x1d   :  { %229 = vmatpush3.bf16.msra.mxu0 %v226_v21 }
  0x1e   :  { %231 = vmatprep.subr.bf16.mxu0 %v230_v24 }
  0x21   :  { %233 = vmatpush3.bf16.msra.mxu0 %v230_v24 }
  0x24   :  { %200 = vmatmul.mubr.f32.vlgmr.msra.gmra.mrb[0].mxu0 %v21_v25 }
  0xf7   :  { %v201_v27 = vpop.f32.mrb[0].mxu0 }
  0xf8   :  { %v127_v28 = vmul.f32 %v201_v27, %v201_v27  ;;  %v104_v29 = vpop.f32.mrb[1].mxu0  ;;  %114 = vst [vmem:[%s343_s2 + $0x8] sm:$0xff] %v201_v27 }
  0xf9   :  { %113 = vst [vmem:[%s343_s2] sm:$0xff] %v104_v29  ;;  %v116_v30 = vadd.f32 %v201_v27, %v104_v29  ;;  %v126_v31 = vmul.f32 %v104_v29, %v104_v29 }
  0xfb   :  { %v117_v32 = vrot.slane %v116_v30, 4  ;;  %v128_v33 = vadd.f32 %v127_v28, %v126_v31 }
  0xfd   :  { %v118_v34 = vadd.f32 %v117_v32, %v116_v30  ;;  %v129_v35 = vrot.slane %v128_v33, 4 }
  0xff   :  { %v119_v36 = vrot.slane %v118_v34, 2  ;;  %v130_v37 = vadd.f32 %v129_v35, %v128_v33 }
 0x101   :  { %v120_v38 = vadd.f32 %v119_v36, %v118_v34  ;;  %v131_v39 = vrot.slane %v130_v37, 2 }
 0x103   :  { %v121_v40 = vrot.slane %v120_v38, 1  ;;  %v132_v41 = vadd.f32 %v131_v39, %v130_v37 }
 0x105   :  { %v122_v43 = vadd.f32 %v121_v40, %v120_v38  ;;  %v133_v44 = vrot.slane %v132_v41, 1 }
 0x107   :  { %v123_v46 = vadd.f32 %v122_v43, %v115_v42  ;;  %v134_v47 = vadd.f32 %v133_v44, %v132_v41 }
 0x109   :  { %124 = vst [vmem:[%s341_s3] sm:$0x1] %v123_v46  ;;  %v135_v48 = vadd.f32 %v134_v47, %v125_v45 }
 0x10b   :  { %136 = vst [vmem:[%s342_s4] sm:$0x1] %v135_v48 }

// kernel: encoder_block_forward.7
= control target key start
LH: loop header
LB: loop body
LE: loop exit
PB: predicated region body
PF: predicated region fallthrough
CT: control target
= control target key end

     0   :  { %s126_s0 = inlined_call_operand.vmem [shape: f32[8,128], index: 0, kind: input, shape index: {}]   ;;  %s127_s1 = inlined_call_operand.vmem [shape: f32[8,128], index: 1, kind: input, shape index: {}]   ;;  %s128_s2 = inlined_call_operand.vmem [shape: f32[1,128], index: 2, kind: input, shape index: {}]   ;;  %s129_s3 = inlined_call_operand.vmem [shape: f32[1,128], index: 3, kind: input, shape index: {}]   ;;  %s130_s4 = inlined_call_operand.vmem [shape: f32[1,128], index: 4, kind: input, shape index: {}]   ;;  %s131_s5 = inlined_call_operand.vmem [shape: f32[1,128], index: 5, kind: input, shape index: {}]   ;;  %s132_s6 = inlined_call_operand.vmem [shape: f32[8,128], index: 6, kind: output, shape index: {}]  }
   0x1   :  { %v23_v0 = vld [vmem:[%s126_s0] sm:$0xff] }
   0x2   :  { %v66_v1 = vld [vmem:[%s128_s2] ss:$0 sm:$0xff] }
   0x3   :  { %v67_v2 = vld [vmem:[%s129_s3] ss:$0 sm:$0xff]  ;;  %v31_v3 = vmul.f32 %v66_v1, %v23_v0 }
   0x4   :  { %v40_v4 = vld [vmem:[%s127_s1] sm:$0xff] }
   0x5   :  { %v68_v5 = vld [vmem:[%s130_s4] ss:$0 sm:$0xff]  ;;  %v39_v7 = vadd.f32 %v67_v2, %v31_v3 }
   0x6   :  { %v48_v6 = vmul.f32 %v68_v5, %v40_v4  ;;  %v69_v8 = vld [vmem:[%s131_s5] ss:$0 sm:$0xff] }
   0x8   :  { %v49_v9 = vadd.f32 %v48_v6, %v39_v7 }
   0xa   :  { %v57_v10 = vadd.f32 %v69_v8, %v49_v9 }
   0xc   :  { %vm58_vm0 = vcmp.gt.f32.partialorder %v57_v10, 0.0  ;;  %v59_v11 = vmul.f32 0.01, %v57_v10 }
   0xe   :  { %v60_v12 = vsel %vm58_vm0, %v57_v10, %v59_v11 }
   0xf   :  { %61 = vst [vmem:[%s132_s6] sm:$0xff] %v60_v12 }

// kernel: encoder_block_forward.6
= control target key start
LH: loop header
LB: loop body
LE: loop exit
PB: predicated region body
PF: predicated region fallthrough
CT: control target
= control target key end

     0   :  { %v444_v3 = vmov 0.0|0.0   ;;  %v445_v4 = vmov 0.0   ;;  %vm446_vm0 = vmmov 0   ;;  %v31_v23 = vlaneseq  ;;  %s675_s1 = inlined_call_operand.vmem [shape: f32[384,128], index: 1, kind: input, shape index: {}]   ;;  %s676_s5 = inlined_call_operand.vmem [shape: f32[1,128], index: 5, kind: output, shape index: {1}]   ;;  %s677_s6 = inlined_call_operand.vmem [shape: f32[1,128], index: 6, kind: output, shape index: {2}]   ;;  %s678_s0 = inlined_call_operand.vmem [shape: f32[8,384], index: 0, kind: input, shape index: {}]   ;;  %s679_s2 = inlined_call_operand.vmem [shape: f32[1,384], index: 2, kind: input, shape index: {}]   ;;  %s680_s3 = inlined_call_operand.vmem [shape: f32[1,384], index: 3, kind: input, shape index: {}]   ;;  %s681_s4 = inlined_call_operand.vmem [shape: f32[8,128], index: 4, kind: output, shape index: {0}]  }
   0x1   :  { %v94_v0 = vld [vmem:[%s675_s1 + $0x80] sm:$0xff]  ;;  %v95_v1 = vld [vmem:[%s675_s1 + $0x88] sm:$0xff]  ;;  %417 = vmatprep.subr.bf16.mxu1 %v444_v3  ;;  %24 = vst [vmem:[%s676_s5] sm:$0x1] %v445_v4  ;;  %25 = vst [vmem:[%s677_s6] sm:$0x1] %v445_v4  ;;  %382 = vmatprep.mubr.msk.f32.mxu1 %vm446_vm0, %v445_v4 }
   0x2   :  { %v78_v2 = vld [vmem:[%s675_s1] sm:$0xff]  ;;  %v385_v5 = vpack.c.bf16 %v95_v1, %v94_v0  ;;  %v79_v6 = vld [vmem:[%s675_s1 + $0x8] sm:$0xff]  ;;  %v96_v11 = vld [vmem:[%s675_s1 + $0x90] sm:$0xff]  ;;  %v553_v33 = vshrl.u32 %v31_v23, 7 }
   0x3   :  { %v110_v7 = vld [vmem:[%s675_s1 + $0x100] sm:$0xff]  ;;  %v111_v8 = vld [vmem:[%s675_s1 + $0x108] sm:$0xff]  ;;  %v387_v9 = vpack.c.bf16 %v79_v6, %v78_v2  ;;  %v97_v12 = vld [vmem:[%s675_s1 + $0x98] sm:$0xff] }
   0x4   :  { %v418_v10 = vpack.c.bf16 %v111_v8, %v110_v7  ;;  %v80_v13 = vld [vmem:[%s675_s1 + $0x10] sm:$0xff]  ;;  %386 = vmatprep.subr.bf16.mxu0 %v385_v5  ;;  %v389_v14 = vpack.c.bf16 %v97_v12, %v96_v11  ;;  %v81_v15 = vld [vmem:[%s675_s1 + $0x18] sm:$0xff]  ;;  %v98_v20 = vld [vmem:[%s675_s1 + $0xa0] sm:$0xff]  ;;  %v37_v44 = vsub.s32 1, %v553_v33  ;;  %v33_v45 = vsub.s32 0, %v553_v33 }
   0x5   :  { %v112_v16 = vld [vmem:[%s675_s1 + $0x110] sm:$0xff]  ;;  %v113_v17 = vld [vmem:[%s675_s1 + $0x118] sm:$0xff]  ;;  %388 = vmatpush3.bf16.msra.mxu0 %v387_v9  ;;  %v391_v18 = vpack.c.bf16 %v81_v15, %v80_v13  ;;  %v99_v21 = vld [vmem:[%s675_s1 + $0xa8] sm:$0xff]  ;;  %v41_v52 = vsub.s32 2, %v553_v33 }
   0x6   :  { %419 = vmatpush3.bf16.msra.mxu1 %v418_v10  ;;  %v421_v19 = vpack.c.bf16 %v113_v17, %v112_v16  ;;  %v82_v22 = vld [vmem:[%s675_s1 + $0x20] sm:$0xff]  ;;  %390 = vmatprep.subr.bf16.mxu0 %v389_v14  ;;  %v393_v24 = vpack.c.bf16 %v99_v21, %v98_v20  ;;  %v83_v25 = vld [vmem:[%s675_s1 + $0x28] sm:$0xff]  ;;  %v100_v28 = vld [vmem:[%s675_s1 + $0xb0] sm:$0xff] }
   0x7   :  { %420 = vmatprep.subr.bf16.mxu1 %v444_v3  ;;  %v114_v26 = vld [vmem:[%s675_s1 + $0x120] sm:$0xff]  ;;  %v115_v27 = vld [vmem:[%s675_s1 + $0x128] sm:$0xff]  ;;  %v101_v29 = vld [vmem:[%s675_s1 + $0xb8] sm:$0xff]  ;;  %v395_v30 = vpack.c.bf16 %v83_v25, %v82_v22 }
   0x8   :  { %v424_v31 = vpack.c.bf16 %v115_v27, %v114_v26  ;;  %v84_v32 = vld [vmem:[%s675_s1 + $0x30] sm:$0xff]  ;;  %v397_v34 = vpack.c.bf16 %v101_v29, %v100_v28  ;;  %v85_v35 = vld [vmem:[%s675_s1 + $0x38] sm:$0xff]  ;;  %v102_v38 = vld [vmem:[%s675_s1 + $0xc0] sm:$0xff] }
   0x9   :  { %392 = vmatpush3.bf16.msra.mxu0 %v391_v18  ;;  %v116_v36 = vld [vmem:[%s675_s1 + $0x130] sm:$0xff]  ;;  %v117_v37 = vld [vmem:[%s675_s1 + $0x138] sm:$0xff]  ;;  %v103_v39 = vld [vmem:[%s675_s1 + $0xc8] sm:$0xff]  ;;  %v399_v40 = vpack.c.bf16 %v85_v35, %v84_v32 }
   0xa   :  { %422 = vmatpush3.bf16.msra.mxu1 %v421_v19  ;;  %394 = vmatprep.subr.bf16.mxu0 %v393_v24  ;;  %v427_v41 = vpack.c.bf16 %v117_v37, %v116_v36  ;;  %v86_v42 = vld [vmem:[%s675_s1 + $0x40] sm:$0xff]  ;;  %v87_v43 = vld [vmem:[%s675_s1 + $0x48] sm:$0xff]  ;;  %v401_v46 = vpack.c.bf16 %v103_v39, %v102_v38  ;;  %v104_v49 = vld [vmem:[%s675_s1 + $0xd0] sm:$0xff] }
   0xb   :  { %423 = vmatprep.subr.bf16.mxu1 %v444_v3  ;;  %v118_v47 = vld [vmem:[%s675_s1 + $0x140] sm:$0xff]  ;;  %v119_v48 = vld [vmem:[%s675_s1 + $0x148] sm:$0xff]  ;;  %v105_v50 = vld [vmem:[%s675_s1 + $0xd8] sm:$0xff]  ;;  %v403_v53 = vpack.c.bf16 %v87_v43, %v86_v42 }
   0xc   :  { %v88_v51 = vld [vmem:[%s675_s1 + $0x50] sm:$0xff]  ;;  %v89_v54 = vld [vmem:[%s675_s1 + $0x58] sm:$0xff]  ;;  %v27_v55 = vld [vmem:[%s678_s0 + $0x8] sm:$0xff]  ;;  %v430_v57 = vpack.c.bf16 %v119_v48, %v118_v47  ;;  %v405_v63 = vpack.c.bf16 %v105_v50, %v104_v49 }
   0xd   :  { %396 = vmatpush3.bf16.msra.mxu0 %v395_v30  ;;  %v29_v56 = vld [vmem:[%s679_s2] sm:$0x7]  ;;  %v120_v58 = vld [vmem:[%s675_s1 + $0x150] sm:$0xff]  ;;  %v121_v59 = vld [vmem:[%s675_s1 + $0x158] sm:$0xff]  ;;  %v407_v8 = vpack.c.bf16 %v89_v54, %v88_v51 }
   0xe   :  { %425 = vmatpush3.bf16.msra.mxu1 %v424_v31  ;;  %398 = vmatprep.subr.bf16.mxu0 %v397_v34  ;;  %v38_v60 = vrot.slane %v29_v56, %v37_v44  ;;  %v49_v61 = vld [vmem:[%s680_s3] sm:$0x7]  ;;  %v34_v62 = vrot.slane %v29_v56, %v33_v45  ;;  %v107_v4 = vld [vmem:[%s675_s1 + $0xe8] sm:$0xff]  ;;  %v28_v6 = vld [vmem:[%s678_s0 + $0x10] sm:$0xff]  ;;  %v42_v7 = vrot.slane %v29_v56, %v41_v52 }
   0xf   :  { %426 = vmatprep.subr.bf16.mxu1 %v444_v3  ;;  %v58_v0 = vrot.slane %v49_v61, %v37_v44  ;;  %v26_v1 = vld [vmem:[%s678_s0] sm:$0xff]  ;;  %v433_v9 = vpack.c.bf16 %v121_v59, %v120_v58  ;;  %v54_v12 = vrot.slane %v49_v61, %v33_v45  ;;  %v91_v13 = vld [vmem:[%s675_s1 + $0x68] sm:$0xff]  ;;  %v62_v18 = vrot.slane %v49_v61, %v41_v52  ;;  %v108_v20 = vld [vmem:[%s675_s1 + $0xf0] sm:$0xff] }
  0x10   :  { %v106_v2 = vld [vmem:[%s675_s1 + $0xe0] sm:$0xff]  ;;  %v47_v5 = vmul.f32 %v38_v60, %v27_v55  ;;  %v46_v11 = vmul.f32 %v34_v62, %v26_v1  ;;  %v123_v15 = vld [vmem:[%s675_s1 + $0x168] sm:$0xff]  ;;  %v48_v17 = vmul.f32 %v42_v7, %v28_v6  ;;  %v109_v21 = vld [vmem:[%s675_s1 + $0xf8] sm:$0xff] }
  0x11   :  { %400 = vmatpush3.bf16.msra.mxu0 %v399_v40  ;;  %v90_v10 = vld [vmem:[%s675_s1 + $0x60] sm:$0xff]  ;;  %v409_v19 = vpack.c.bf16 %v107_v4, %v106_v2  ;;  %v92_v25 = vld [vmem:[%s675_s1 + $0x70] sm:$0xff]  ;;  %v413_v29 = vpack.c.bf16 %v109_v21, %v108_v20  ;;  %v93_v30 = vld [vmem:[%s675_s1 + $0x78] sm:$0xff] }
  0x12   :  { %428 = vmatpush3.bf16.msra.mxu1 %v427_v41  ;;  %402 = vmatprep.subr.bf16.mxu0 %v401_v46  ;;  %v122_v14 = vld [vmem:[%s675_s1 + $0x160] sm:$0xff]  ;;  %v67_v16 = vadd.f32 %v58_v0, %v47_v5  ;;  %v411_v23 = vpack.c.bf16 %v91_v13, %v90_v10  ;;  %v66_v27 = vadd.f32 %v54_v12, %v46_v11  ;;  %v124_v31 = vld [vmem:[%s675_s1 + $0x170] sm:$0xff]  ;;  %v125_v32 = vld [vmem:[%s675_s1 + $0x178] sm:$0xff] }
  0x13   :  { %429 = vmatprep.subr.bf16.mxu1 %v444_v3  ;;  %v436_v24 = vpack.c.bf16 %v123_v15, %v122_v14  ;;  %v68_v28 = vadd.f32 %v62_v18, %v48_v17  ;;  %v415_v33 = vpack.c.bf16 %v93_v30, %v92_v25  ;;  %v439_v34 = vpack.c.bf16 %v125_v32, %v124_v31  ;;  %v267_v54 = vld [vmem:[%s676_s5] sm:$0x1] }
  0x14   :  { %vm70_vm1 = vcmp.gt.f32.partialorder %v67_v16, 0.0  ;;  %v73_v22 = vmul.f32 0.01, %v67_v16  ;;  %v72_v35 = vmul.f32 0.01, %v66_v27  ;;  %vm69_vm2 = vcmp.gt.f32.partialorder %v66_v27, 0.0 }
  0x15   :  { %404 = vmatpush3.bf16.msra.mxu0 %v403_v53  ;;  %v74_v36 = vmul.f32 0.01, %v68_v28  ;;  %vm71_vm3 = vcmp.gt.f32.partialorder %v68_v28, 0.0 }
  0x16   :  { %431 = vmatpush3.bf16.msra.mxu1 %v430_v57  ;;  %406 = vmatprep.subr.bf16.mxu0 %v405_v63  ;;  %v76_v26 = vsel %vm70_vm1, %v67_v16, %v73_v22  ;;  %v75_v37 = vsel %vm69_vm2, %v66_v27, %v72_v35  ;;  %v276_v57 = vld [vmem:[%s677_s6] sm:$0x1] }
  0x17   :  { %432 = vmatprep.subr.bf16.mxu1 %v444_v3  ;;  %190 = vmatprep.mubr.f32.mxu0 %v76_v26  ;;  %v77_v38 = vsel %vm71_vm3, %v68_v28, %v74_v36 }
  0x19   :  { %408 = vmatpush3.bf16.msra.mxu0 %v407_v8 }
  0x1a   :  { %434 = vmatpush3.bf16.msra.mxu1 %v433_v9  ;;  %410 = vmatprep.subr.bf16.mxu0 %v409_v19 }
  0x1b   :  { %435 = vmatprep.subr.bf16.mxu1 %v444_v3 }
  0x1d   :  { %412 = vmatpush3.bf16.msra.mxu0 %v411_v23 }
  0x1e   :  { %437 = vmatpush3.bf16.msra.mxu1 %v436_v24  ;;  %414 = vmatprep.subr.bf16.mxu0 %v413_v29 }
  0x1f   :  { %438 = vmatprep.subr.bf16.mxu1 %v444_v3 }
  0x21   :  { %416 = vmatpush3.bf16.msra.mxu0 %v415_v33 }
  0x22   :  { %440 = vmatpush3.bf16.msra.mxu1 %v439_v34 }
  0x24   :  { %191 = vmatmul.mubr.f32.vlgmr.msra.gmra.mrb[0].mxu0 %v75_v37 }
  0x25   :  { %383 = vmatmul.mubr.f32.vlgmr.msra.gmra.mrb[0].mxu1 %v77_v38 }
  0xf7   :  { %v330_v39 = vpop.f32.mrb[0].mxu0 }
  0xf8   :  { %v262_v40 = vpop.f32.mrb[0].mxu1  ;;  %v331_v41 = vpop.f32.mrb[1].mxu0 }
  0xf9   :  { %v384_v42 = vpop.f32.mrb[1].mxu1  ;;  %v332_v43 = vadd.f32 %v331_v41, %v330_v39 }
  0xfb   :  { %v263_v44 = vadd.f32 %v332_v43, %v262_v40 }
  0xfd   :  { %266 = vst [vmem:[%s681_s4] sm:$0xff] %v263_v44  ;;  %v268_v45 = vrot.slane %v263_v44, 4  ;;  %v277_v3 = vmul.f32 %v263_v44, %v263_v44 }
  0xff   :  { %v269_v46 = vadd.f32 %v268_v45, %v263_v44  ;;  %v278_v47 = vrot.slane %v277_v3, 4 }
 0x101   :  { %v270_v48 = vrot.slane %v269_v46, 2  ;;  %v279_v49 = vadd.f32 %v278_v47, %v277_v3 }
 0x103   :  { %v271_v50 = vadd.f32 %v270_v48, %v269_v46  ;;  %v280_v51 = vrot.slane %v279_v49, 2 }
 0x105   :  { %v272_v52 = vrot.slane %v271_v50, 1  ;;  %v281_v53 = vadd.f32 %v280_v51, %v279_v49 }
 0x107   :  { %v273_v55 = vadd.f32 %v272_v52, %v271_v50  ;;  %v282_v56 = vrot.slane %v281_v53, 1 }
 0x109   :  { %v274_v58 = vadd.f32 %v273_v55, %v267_v54  ;;  %v283_v59 = vadd.f32 %v282_v56, %v281_v53 }
 0x10b   :  { %275 = vst [vmem:[%s676_s5] sm:$0x1] %v274_v58  ;;  %v284_v60 = vadd.f32 %v283_v59, %v276_v57 }
 0x10d   :  { %285 = vst [vmem:[%s677_s6] sm:$0x1] %v284_v60 }

</bundles_post_ra>
